<compile_context>
chip_gen: v6e
topology: v6e:2x2x1
jax: 0.10.0
libtpu: 0.0.40
codegen_flags: <defaults>
</compile_context>

<pallas_src>
import functools

import jax
import jax.numpy as jnp
from jax.experimental import pallas as pl
from jax.experimental.pallas import tpu as pltpu


def _dice_partial_kernel(l_ref, t_ref, inter_ref, union_ref,
                         inter_acc, union_acc, *, tail_rem):
    """Accumulate per-row sum(l*t) and sum(l+t) over lane chunks.

    Grid = (n_chunks,) ("arbitrary" reduction axis).  Scratch accumulators
    persist across chunks; outputs are written once on the last chunk.
    `tail_rem` is None when tile_m divides the row length, else the number of
    valid lanes in the final (partial) chunk.
    """
    j = pl.program_id(0)
    n_chunks = pl.num_programs(0)

    @pl.when(j == 0)
    def _init():
        inter_acc[...] = jnp.zeros_like(inter_acc)
        union_acc[...] = jnp.zeros_like(union_acc)

    def accumulate(valid_lanes):
        l = l_ref[...].astype(jnp.float32)          # (R, TM)
        t = t_ref[...].astype(jnp.float32)          # (R, TM)
        if valid_lanes is not None:
            col = jax.lax.broadcasted_iota(jnp.int32, l.shape, 1)
            keep = col < valid_lanes                 # static constant compare
            l = jnp.where(keep, l, 0.0)
            t = jnp.where(keep, t, 0.0)
        inter_acc[...] += jnp.sum(l * t, axis=1, keepdims=True)   # (R, 1)
        union_acc[...] += jnp.sum(l + t, axis=1, keepdims=True)   # (R, 1)

    if tail_rem is None:
        # Row length divides evenly: no masking anywhere.
        accumulate(None)
    else:
        @pl.when(j < n_chunks - 1)
        def _steady():
            accumulate(None)

        @pl.when(j == n_chunks - 1)
        def _tail():
            accumulate(tail_rem)

    @pl.when(j == n_chunks - 1)
    def _finalize():
        inter_ref[...] = inter_acc[...]
        union_ref[...] = union_acc[...]


def _tpu_vmem_bytes():
    """Physical VMEM capacity; conservative (v7x-sized) fallback if unknown."""
    try:
        return int(pltpu.get_tpu_info().vmem_capacity_bytes)
    except Exception:
        return 64 * 1024 * 1024


def _block_config():
    """(target bytes per input block, vmem_limit_bytes) tuned per generation."""
    vmem = _tpu_vmem_bytes()
    if vmem >= 96 * 1024 * 1024:            # v5e / v6e: 128 MiB VMEM
        return 16 * 1024 * 1024, 80 * 1024 * 1024
    return 8 * 1024 * 1024, 44 * 1024 * 1024  # v7x: 64 MiB VMEM


def _choose_row_fold(n, c, m, max_fold=64):
    """Smallest factor of m folding N*C up to a multiple of 8 sublanes."""
    rows0 = n * c
    if rows0 % 8 == 0:
        return 1
    for f in range(1, max_fold + 1):
        if m % f == 0 and (rows0 * f) % 8 == 0 and (m // f) >= 128:
            return f
    return 1


def _choose_tile_m(rows, m, itemsize, target_block_bytes):
    """Largest lane tile (multiple of 128) giving ~target bytes per block,
    floored at 2048 lanes (>= 8 KiB contiguous per row segment for DMA)."""
    m_pad = pl.cdiv(m, 128) * 128
    tile = (target_block_bytes // max(1, rows * itemsize)) // 128 * 128
    tile = max(tile, 2048)
    tile = min(tile, m_pad)
    return int(tile)


@functools.partial(jax.jit, static_argnames=("tile_m", "row_fold"))
def dice_mean_loss(logits, targets, tile_m=None, row_fold=None):
    """logits, targets: (N, C, D, H, W). Returns the scalar DiceMeanLoss."""
    n, c, d, h, w = logits.shape
    m0 = d * h * w

    if row_fold is None:
        row_fold = _choose_row_fold(n, c, m0)
    rows = n * c * row_fold
    m = m0 // row_fold

    # Free, contiguous reshapes (no transpose / pad => no extra HBM passes).
    l2 = logits.reshape(rows, m)
    t2 = targets.reshape(rows, m)

    itemsize = jnp.dtype(logits.dtype).itemsize
    target_block_bytes, vmem_limit = _block_config()
    if tile_m is None:
        tile_m = _choose_tile_m(rows, m, itemsize, target_block_bytes)

    n_chunks = pl.cdiv(m, tile_m)
    rem = m - (n_chunks - 1) * tile_m          # valid lanes in the last chunk
    tail_rem = None if rem == tile_m else rem  # static

    kernel = functools.partial(_dice_partial_kernel, tail_rem=tail_rem)

    inter_p, union_p = pl.pallas_call(
        kernel,
        out_shape=(
            jax.ShapeDtypeStruct((rows, 1), jnp.float32),
            jax.ShapeDtypeStruct((rows, 1), jnp.float32),
        ),
        grid_spec=pltpu.PrefetchScalarGridSpec(
            num_scalar_prefetch=0,
            grid=(n_chunks,),
            in_specs=[
                pl.BlockSpec((rows, tile_m), lambda j: (0, j)),
                pl.BlockSpec((rows, tile_m), lambda j: (0, j)),
            ],
            out_specs=(
                pl.BlockSpec((rows, 1), lambda j: (0, 0)),
                pl.BlockSpec((rows, 1), lambda j: (0, 0)),
            ),
            scratch_shapes=[
                pltpu.VMEM((rows, 1), jnp.float32),
                pltpu.VMEM((rows, 1), jnp.float32),
            ],
        ),
        compiler_params=pltpu.CompilerParams(
            dimension_semantics=("arbitrary",),
            vmem_limit_bytes=vmem_limit,
        ),
    )(l2, t2)

    # Tiny final combine in plain JAX: fold the per-(batch, fold) partials,
    # compute per-class dice, then the mean-based loss.
    inter = jnp.sum(inter_p.reshape(n, c, row_fold), axis=(0, 2))   # (C,)
    union = jnp.sum(union_p.reshape(n, c, row_fold), axis=(0, 2))   # (C,)
    dice = (2.0 * inter + 1.0) / (union + 1.0)
    return 1.0 - jnp.mean(dice)


def _reference_dice_mean_loss(logits, targets):
    """Plain-JAX reference matching the PyTorch module semantics."""
    c = logits.shape[1]
    dice_sum = 0.0
    for i in range(c):
        li = logits[:, i].astype(jnp.float32)
        ti = targets[:, i].astype(jnp.float32)
        inter = jnp.sum(li * ti)
        union = jnp.sum(li) + jnp.sum(ti)
        dice_sum += (2.0 * inter + 1.0) / (union + 1.0)
    return 1.0 - dice_sum / c


def _check(loss, ref, tol):
    assert jnp.allclose(loss, ref, rtol=tol, atol=tol), (loss, ref)


if __name__ == "__main__":
    key = jax.random.PRNGKey(0)

    def make_inputs(k, shape, dtype=jnp.float32):
        k1, k2 = jax.random.split(k)
        logits = jax.nn.sigmoid(jax.random.normal(k1, shape, jnp.float32))
        targets = (jax.random.uniform(k2, shape) > 0.5).astype(jnp.float32)
        return logits.astype(dtype), targets.astype(dtype)

    # Case 1: rows = N*C = 8 (no fold), single full chunk, no masking.
    key, k = jax.random.split(key)
    logits, targets = make_inputs(k, (2, 4, 4, 8, 8))
    loss = jax.block_until_ready(dice_mean_loss(logits, targets))
    _check(loss, _reference_dice_mean_loss(logits, targets), 1e-5)

    # Case 2: forced small tile -> row fold (6 -> 24 rows), two chunks,
    # unmasked steady chunk + masked partial tail.
    key, k = jax.random.split(key)
    logits, targets = make_inputs(k, (2, 3, 4, 8, 20))
    loss = jax.block_until_ready(dice_mean_loss(logits, targets, tile_m=128))
    _check(loss, _reference_dice_mean_loss(logits, targets), 1e-5)

    # Case 3: bf16 inputs (HBM traffic at bf16, f32 accumulation), row fold
    # 4 -> 8 rows, single partial chunk (masked tail).
    key, k = jax.random.split(key)
    logits, targets = make_inputs(k, (1, 4, 4, 8, 10), jnp.bfloat16)
    loss = jax.block_until_ready(dice_mean_loss(logits, targets))
    _check(loss, _reference_dice_mean_loss(logits, targets), 1e-4)

    # Case 4: no valid fold (rows=3 < 8), single masked chunk.
    key, k = jax.random.split(key)
    logits, targets = make_inputs(k, (1, 3, 2, 8, 9))
    loss = jax.block_until_ready(dice_mean_loss(logits, targets))
    _check(loss, _reference_dice_mean_loss(logits, targets), 1e-5)

    # Case 5: forced tile with 4 full chunks -> exercises the mask-free
    # steady-state accumulation path across multiple grid steps.
    key, k = jax.random.split(key)
    logits, targets = make_inputs(k, (2, 4, 8, 16, 16))
    loss = jax.block_until_ready(dice_mean_loss(logits, targets, tile_m=512))
    _check(loss, _reference_dice_mean_loss(logits, targets), 1e-5)

    print("KERNEL_OK")
</pallas_src>

<mosaic_0001>
module attributes {stable_mosaic.version = 11 : i64} {
  func.func @_dice_partial_kernel(%arg0: i32, %arg1: memref<8x256xf32, #tpu.memory_space<vmem>>, %arg2: memref<8x256xf32, #tpu.memory_space<vmem>>, %arg3: memref<8x1xf32, #tpu.memory_space<vmem>>, %arg4: memref<8x1xf32, #tpu.memory_space<vmem>>, %arg5: memref<8x1xf32, #tpu.memory_space<vmem>>, %arg6: memref<8x1xf32, #tpu.memory_space<vmem>>) attributes {dimension_semantics = [#tpu.dimension_semantics<arbitrary>], iteration_bounds = array<i64: 1>, scalar_prefetch = 0 : i64, scratch_operands = 2 : i64, tpu.core_type = #tpu.core_type<tc>, window_params = [{transform_indices = @transform_0, window_bounds = array<i64: 8, 256>}, {transform_indices = @transform_1, window_bounds = array<i64: 8, 256>}, {pipeline_mode = #tpu.pipeline_mode<synchronous>, transform_indices = @transform_2, window_bounds = array<i64: 8, 1>}, {pipeline_mode = #tpu.pipeline_mode<synchronous>, transform_indices = @transform_3, window_bounds = array<i64: 8, 1>}]} {
    %c0_i32 = arith.constant 0 : i32
    %0 = arith.cmpi eq, %arg0, %c0_i32 : i32
    %1 = arith.extui %0 : i1 to i32
    %c0_i32_0 = arith.constant 0 : i32
    %2 = arith.cmpi ne, %1, %c0_i32_0 : i32
    scf.if %2 {
      %cst_15 = arith.constant 0.000000e+00 : f32
      %20 = vector.broadcast %cst_15 : f32 to vector<8x1xf32>
      %c0_16 = arith.constant 0 : index
      %c0_17 = arith.constant 0 : index
      %21 = vector.load %arg5[%c0_16, %c0_17] : memref<8x1xf32, #tpu.memory_space<vmem>>, vector<8x1xf32>
      tpu.vector_store %arg5[%c0_16, %c0_17], %20 {strides = array<i32>} : memref<8x1xf32, #tpu.memory_space<vmem>>, vector<8x1xf32>,
      %cst_18 = arith.constant 0.000000e+00 : f32
      %22 = vector.broadcast %cst_18 : f32 to vector<8x1xf32>
      %c0_19 = arith.constant 0 : index
      %c0_20 = arith.constant 0 : index
      %23 = vector.load %arg6[%c0_19, %c0_20] : memref<8x1xf32, #tpu.memory_space<vmem>>, vector<8x1xf32>
      tpu.vector_store %arg6[%c0_19, %c0_20], %22 {strides = array<i32>} : memref<8x1xf32, #tpu.memory_space<vmem>>, vector<8x1xf32>,
    } else {
    }
    %c0 = arith.constant 0 : index
    %c0_1 = arith.constant 0 : index
    %3 = vector.load %arg1[%c0, %c0_1] : memref<8x256xf32, #tpu.memory_space<vmem>>, vector<8x256xf32>
    %c0_2 = arith.constant 0 : index
    %c0_3 = arith.constant 0 : index
    %4 = vector.load %arg2[%c0_2, %c0_3] : memref<8x256xf32, #tpu.memory_space<vmem>>, vector<8x256xf32>
    %c0_4 = arith.constant 0 : index
    %c0_5 = arith.constant 0 : index
    %5 = vector.load %arg5[%c0_4, %c0_5] : memref<8x1xf32, #tpu.memory_space<vmem>>, vector<8x1xf32>
    %6 = arith.mulf %3, %4 : vector<8x256xf32>
    %cst = arith.constant dense<0.000000e+00> : vector<8xf32>
    %7 = vector.multi_reduction <add>, %6, %cst [1] : vector<8x256xf32> to vector<8xf32>
    %8 = vector.shape_cast %7 : vector<8xf32> to vector<8x1xf32>
    %9 = arith.addf %5, %8 : vector<8x1xf32>
    %c0_6 = arith.constant 0 : index
    %c0_7 = arith.constant 0 : index
    %10 = vector.load %arg5[%c0_6, %c0_7] : memref<8x1xf32, #tpu.memory_space<vmem>>, vector<8x1xf32>
    tpu.vector_store %arg5[%c0_6, %c0_7], %9 {strides = array<i32>} : memref<8x1xf32, #tpu.memory_space<vmem>>, vector<8x1xf32>,
    %c0_8 = arith.constant 0 : index
    %c0_9 = arith.constant 0 : index
    %11 = vector.load %arg6[%c0_8, %c0_9] : memref<8x1xf32, #tpu.memory_space<vmem>>, vector<8x1xf32>
    %12 = arith.addf %3, %4 : vector<8x256xf32>
    %cst_10 = arith.constant dense<0.000000e+00> : vector<8xf32>
    %13 = vector.multi_reduction <add>, %12, %cst_10 [1] : vector<8x256xf32> to vector<8xf32>
    %14 = vector.shape_cast %13 : vector<8xf32> to vector<8x1xf32>
    %15 = arith.addf %11, %14 : vector<8x1xf32>
    %c0_11 = arith.constant 0 : index
    %c0_12 = arith.constant 0 : index
    %16 = vector.load %arg6[%c0_11, %c0_12] : memref<8x1xf32, #tpu.memory_space<vmem>>, vector<8x1xf32>
    tpu.vector_store %arg6[%c0_11, %c0_12], %15 {strides = array<i32>} : memref<8x1xf32, #tpu.memory_space<vmem>>, vector<8x1xf32>,
    %c0_i32_13 = arith.constant 0 : i32
    %17 = arith.cmpi eq, %arg0, %c0_i32_13 : i32
    %18 = arith.extui %17 : i1 to i32
    %c0_i32_14 = arith.constant 0 : i32
    %19 = arith.cmpi ne, %18, %c0_i32_14 : i32
    scf.if %19 {
      %c0_15 = arith.constant 0 : index
      %c0_16 = arith.constant 0 : index
      %20 = vector.load %arg5[%c0_15, %c0_16] : memref<8x1xf32, #tpu.memory_space<vmem>>, vector<8x1xf32>
      %c0_17 = arith.constant 0 : index
      %c0_18 = arith.constant 0 : index
      %21 = vector.load %arg3[%c0_17, %c0_18] : memref<8x1xf32, #tpu.memory_space<vmem>>, vector<8x1xf32>
      tpu.vector_store %arg3[%c0_17, %c0_18], %20 {strides = array<i32>} : memref<8x1xf32, #tpu.memory_space<vmem>>, vector<8x1xf32>,
      %c0_19 = arith.constant 0 : index
      %c0_20 = arith.constant 0 : index
      %22 = vector.load %arg6[%c0_19, %c0_20] : memref<8x1xf32, #tpu.memory_space<vmem>>, vector<8x1xf32>
      %c0_21 = arith.constant 0 : index
      %c0_22 = arith.constant 0 : index
      %23 = vector.load %arg4[%c0_21, %c0_22] : memref<8x1xf32, #tpu.memory_space<vmem>>, vector<8x1xf32>
      tpu.vector_store %arg4[%c0_21, %c0_22], %22 {strides = array<i32>} : memref<8x1xf32, #tpu.memory_space<vmem>>, vector<8x1xf32>,
    } else {
    }
    return
  }
  func.func @transform_0(%arg0: i32) -> (i32, i32) {
    %c0_i32 = arith.constant 0 : i32
    %c0_i32_0 = arith.constant 0 : i32
    return %c0_i32, %arg0 : i32, i32
  }
  func.func @transform_1(%arg0: i32) -> (i32, i32) {
    %c0_i32 = arith.constant 0 : i32
    %c0_i32_0 = arith.constant 0 : i32
    return %c0_i32, %arg0 : i32, i32
  }
  func.func @transform_2(%arg0: i32) -> (i32, i32) {
    %c0_i32 = arith.constant 0 : i32
    %c0_i32_0 = arith.constant 0 : i32
    %c0_i32_1 = arith.constant 0 : i32
    return %c0_i32, %c0_i32_0 : i32, i32
  }
  func.func @transform_3(%arg0: i32) -> (i32, i32) {
    %c0_i32 = arith.constant 0 : i32
    %c0_i32_0 = arith.constant 0 : i32
    %c0_i32_1 = arith.constant 0 : i32
    return %c0_i32, %c0_i32_0 : i32, i32
  }
}

</mosaic_0001>

<bundles_post_ra>
// kernel: dice_mean_loss.1
= control target key start
LH: loop header
LB: loop body
LE: loop exit
PB: predicated region body
PF: predicated region fallthrough
CT: control target
= control target key end

     0   :  { %vm17_vm0 = vcmask 7168   ;;  %v57_v3 = vmov 0.0   ;;  %s102_s0 = inlined_call_operand.vmem [shape: f32[8,256], index: 0, kind: input, shape index: {}]   ;;  %s103_s1 = inlined_call_operand.vmem [shape: f32[8,256], index: 1, kind: input, shape index: {}]   ;;  %s104_s2 = inlined_call_operand.vmem [shape: f32[8,1], index: 2, kind: output, shape index: {0}]   ;;  %s105_s3 = inlined_call_operand.vmem [shape: f32[8,1], index: 3, kind: output, shape index: {1}]  }
   0x1   :  { %v20_v0 = vld [vmem:[%s102_s0] sm:$0xff]  ;;  %v21_v1 = vld [vmem:[%s102_s0 + $0x8] sm:$0xff]  ;;  %18 = vst.msk [vmem:[#allocation2] sm:$0xff] %vm17_vm0, %v57_v3  ;;  %19 = vst.msk [vmem:[#allocation3] sm:$0xff] %vm17_vm0, %v57_v3 }
   0x2   :  { %v22_v2 = vld [vmem:[%s103_s1] sm:$0xff]  ;;  %v23_v4 = vld [vmem:[%s103_s1 + $0x8] sm:$0xff] }
   0x3   :  { %v25_v5 = vmul.f32 %v22_v2, %v20_v0  ;;  %v26_v6 = vmul.f32 %v23_v4, %v21_v1  ;;  %v34_v7 = vadd.f32 %v22_v2, %v20_v0  ;;  %v35_v8 = vadd.f32 %v23_v4, %v21_v1 }
   0x5   :  { %v27_v9 = vadd.f32 %v26_v6, %v25_v5  ;;  %v36_v10 = vadd.f32 %v35_v8, %v34_v7 }
   0x7   :  { %28 = vadd.xlane.f32.xlu0 %v27_v9 }
   0x8   :  { %v24_v11 = vld [vmem:[#allocation2] sm:$0xff]  ;;  %v33_v14 = vld [vmem:[#allocation3] sm:$0xff] }
   0xb   :  { %37 = vadd.xlane.f32.xlu0 %v36_v10 }
  0x90   :  { %v29_v12 = vpop.xlane.xlu0 %28 }
  0x91   :  { %v30_v13 = vadd.f32 %v29_v12, %v24_v11 }
  0x93   :  { %32 = vst.msk [vmem:[#allocation2] sm:$0xff] %vm17_vm0, %v30_v13 }
  0x94   :  { %v38_v15 = vpop.xlane.xlu0 %37 }
  0x95   :  { %v39_v16 = vadd.f32 %v38_v15, %v33_v14 }
  0x97   :  { %40 = vst.msk [vmem:[#allocation3] sm:$0xff] %vm17_vm0, %v39_v16 }
  0x9a   :  { %v44_v17 = vld [vmem:[#allocation2] sm:$0xff] }
  0x9b   :  { %45 = vst.msk [vmem:[%s104_s2] sm:$0xff] %vm17_vm0, %v44_v17 }
  0x9e   :  { %v46_v18 = vld [vmem:[#allocation3] sm:$0xff] }
  0x9f   :  { %47 = vst.msk [vmem:[%s105_s3] sm:$0xff] %vm17_vm0, %v46_v18 }

</bundles_post_ra>
